<compile_context>
chip_gen: v7x
topology: tpu7x:2x2x1
jax: 0.10.0
libtpu: 0.0.40
codegen_flags: <defaults>
</compile_context>

<pallas_src>
import functools

import jax
import jax.numpy as jnp
from jax import lax
from jax.experimental import pallas as pl
from jax.experimental.pallas import tpu as pltpu


def _round_up(x, m):
    return (x + m - 1) // m * m


def _vmem_capacity_bytes():
    try:
        info = pltpu.get_tpu_info()
        cap = int(getattr(info, "vmem_capacity_bytes", 0) or 0)
        if cap > 0:
            return cap
    except Exception:
        pass
    return 64 << 20  # conservative default = v7x per-TensorCore VMEM


def _estimate_vmem_bytes(tile, wp, cin_pad, cout, use_im2col):
    thalo_pad = _round_up(tile + 2 * wp + 2, 128)
    xbuf = 2 * cin_pad * thalo_pad * 2            # double-buffered bf16 halo slab
    p = 9 * cin_pad * tile * 2 if use_im2col else 0
    w = 2 * 9 * cin_pad * cout * 2                # pipelined bf16 weight block
    out = 2 * cout * tile * 4                     # double-buffered f32 output block
    acc = cout * tile * 4                         # f32 accumulator
    return xbuf + p + w + out + acc + (1 << 20)   # + slack


def _pick_tile(m, wp, cin_pad, cout, use_im2col, vmem_cap):
    """Largest 128-multiple spatial tile that fits the chip-aware VMEM budget."""
    budget = min(int(vmem_cap * 0.55), 80 << 20)
    # 128-MiB-VMEM chips (v5e/v6e) get a bigger cap than 64-MiB v7x.
    cap = 8192 if vmem_cap >= (96 << 20) else 4096
    m128 = _round_up(m, 128)
    if m128 >= 256:
        # at least 2 tiles so the manual prefetch has something to overlap with
        upper = min(cap, _round_up(-(-m // 2), 128))
    else:
        upper = min(cap, m128)
    tile = max(128, upper)
    while tile > 128 and _estimate_vmem_bytes(tile, wp, cin_pad, cout, use_im2col) > budget:
        tile -= 128
    return tile


def _halo_dma(x_hbm, xbuf, sem, n, t, slot, tile, thalo_pad):
    start = pl.multiple_of(t * tile, 128)
    return pltpu.make_async_copy(
        x_hbm.at[n, :, pl.ds(start, thalo_pad)], xbuf.at[slot], sem.at[slot])


def _conv_kernel_im2col(x_hbm, w_ref, b_ref, o_ref, xbuf, sem, p_ref, *,
                        tile, thalo_pad, wp, cin_pad, num_tiles):
    # Small-Cin path: fused im2col + single K = 9*cin_pad MXU dot.
    n = pl.program_id(0)
    t = pl.program_id(1)
    slot = t % 2

    @pl.when(t == 0)   # prime; t is the inner 'arbitrary' axis so this fires per image/core
    def _():
        _halo_dma(x_hbm, xbuf, sem, n, t, slot, tile, thalo_pad).start()

    @pl.when(t + 1 < num_tiles)  # prefetch next spatial tile of the same image
    def _():
        _halo_dma(x_hbm, xbuf, sem, n, t + 1, 1 - slot, tile, thalo_pad).start()

    _halo_dma(x_hbm, xbuf, sem, n, t, slot, tile, thalo_pad).wait()

    xv = xbuf.at[slot]
    for k in range(9):                   # static unroll over the 3x3 taps
        dy, dx = divmod(k, 3)
        off = dy * wp + dx               # static lane offset of this tap
        p_ref[k * cin_pad:(k + 1) * cin_pad, :] = xv[:, off:off + tile]

    acc = jnp.dot(w_ref[...], p_ref[...], preferred_element_type=jnp.float32)
    y = acc + b_ref[...]                 # conv bias + eval BatchNorm (pre-folded, f32)
    o_ref[0] = jnp.maximum(y, 0.0).astype(o_ref.dtype)   # ReLU (Dropout = id in eval)


def _conv_kernel_direct(x_hbm, w_ref, b_ref, o_ref, xbuf, sem, *,
                        tile, thalo_pad, wp, cin_pad, num_tiles):
    # Large-Cin path: 9 accumulating dots directly on shifted DMA-buffer slices
    # (no im2col scratch -> no vector-store saturation).
    n = pl.program_id(0)
    t = pl.program_id(1)
    slot = t % 2

    @pl.when(t == 0)
    def _():
        _halo_dma(x_hbm, xbuf, sem, n, t, slot, tile, thalo_pad).start()

    @pl.when(t + 1 < num_tiles)
    def _():
        _halo_dma(x_hbm, xbuf, sem, n, t + 1, 1 - slot, tile, thalo_pad).start()

    _halo_dma(x_hbm, xbuf, sem, n, t, slot, tile, thalo_pad).wait()

    xv = xbuf.at[slot]
    acc = None
    for k in range(9):
        dy, dx = divmod(k, 3)
        off = dy * wp + dx
        d = jnp.dot(w_ref[k], xv[:, off:off + tile],
                    preferred_element_type=jnp.float32)
        acc = d if acc is None else acc + d
    y = acc + b_ref[...]
    o_ref[0] = jnp.maximum(y, 0.0).astype(o_ref.dtype)


def conv_ucolor_forward(x_nchw, params, *, kernelsize=3, padding=1, stride=1,
                        compact_output=True):
    assert kernelsize == 3 and padding == 1 and stride == 1

    w = params["conv_w"].astype(jnp.float32)      # (Cout, Cin, 3, 3)  PyTorch OIHW
    b = params["conv_b"].astype(jnp.float32)      # (Cout,)
    gamma = params["bn_gamma"].astype(jnp.float32)
    beta = params["bn_beta"].astype(jnp.float32)
    mean = params["bn_mean"].astype(jnp.float32)
    var = params["bn_var"].astype(jnp.float32)
    eps = 1e-5

    N, Cin, H, W = x_nchw.shape
    Cout = w.shape[0]
    Wp = W + 2                       # padded width = flattened row stride
    M = H * Wp                       # flat outputs per (n, cout), incl. 2 junk cols/row

    cin_pad = _round_up(max(Cin, 1), 8)
    use_im2col = cin_pad < 32
    vmem_cap = _vmem_capacity_bytes()
    tile = _pick_tile(M, Wp, cin_pad, Cout, use_im2col, vmem_cap)
    num_tiles = -(-M // tile)
    thalo_pad = _round_up(tile + 2 * Wp + 2, 128)          # 128-aligned halo window
    lin = max((H + 2) * Wp, (num_tiles - 1) * tile + thalo_pad)

    # ---- plain-JAX glue: one bf16 copy of the input, no halo duplication ----
    x = x_nchw.astype(jnp.bfloat16)
    xp = jnp.pad(x, ((0, 0), (0, cin_pad - Cin), (1, 1), (1, 1)))   # (N,cin_pad,H+2,Wp)
    x_flat = xp.reshape(N, cin_pad, (H + 2) * Wp)
    x_flat = jnp.pad(x_flat, ((0, 0), (0, 0), (0, lin - (H + 2) * Wp)))

    # fold conv bias + eval BatchNorm; fold in f32, then cast weights to bf16
    scale = gamma / jnp.sqrt(var + eps)                              # (Cout,)
    w_tap = jnp.transpose(w, (0, 2, 3, 1))                           # (Cout,3,3,Cin)
    w_tap = jnp.pad(w_tap, ((0, 0), (0, 0), (0, 0), (0, cin_pad - Cin)))
    w_tap = w_tap * scale[:, None, None, None]
    shift = ((b - mean) * scale + beta).reshape(Cout, 1)             # f32 (Cout,1)

    if use_im2col:
        w_oper = w_tap.reshape(Cout, 9 * cin_pad).astype(jnp.bfloat16)
        w_spec = pl.BlockSpec((Cout, 9 * cin_pad), lambda n, t: (0, 0))
        scratch = [pltpu.VMEM((2, cin_pad, thalo_pad), jnp.bfloat16),
                   pltpu.SemaphoreType.DMA((2,)),
                   pltpu.VMEM((9 * cin_pad, tile), jnp.bfloat16)]
        kernel = functools.partial(_conv_kernel_im2col, tile=tile,
                                   thalo_pad=thalo_pad, wp=Wp,
                                   cin_pad=cin_pad, num_tiles=num_tiles)
    else:
        w_oper = (jnp.transpose(w_tap, (1, 2, 0, 3))                 # (3,3,Cout,cin_pad)
                  .reshape(9, Cout, cin_pad).astype(jnp.bfloat16))
        w_spec = pl.BlockSpec((9, Cout, cin_pad), lambda n, t: (0, 0, 0))
        scratch = [pltpu.VMEM((2, cin_pad, thalo_pad), jnp.bfloat16),
                   pltpu.SemaphoreType.DMA((2,))]
        kernel = functools.partial(_conv_kernel_direct, tile=tile,
                                   thalo_pad=thalo_pad, wp=Wp,
                                   cin_pad=cin_pad, num_tiles=num_tiles)

    est = _estimate_vmem_bytes(tile, Wp, cin_pad, Cout, use_im2col)
    vmem_limit = max(int(est * 1.5), 16 << 20)
    vmem_limit = int(min(vmem_limit, int(vmem_cap * 0.75), 100 << 20))

    flops = 2 * N * num_tiles * tile * 9 * cin_pad * Cout
    bytes_accessed = (N * cin_pad * lin * 2               # bf16 input (incl. padding)
                      + int(w_oper.size) * 2              # bf16 weights
                      + Cout * 4                          # f32 shift
                      + N * Cout * num_tiles * tile * 4)  # f32 output (incl. junk cols)
    cost = pl.CostEstimate(flops=flops, transcendentals=0,
                           bytes_accessed=bytes_accessed)

    out_flat = pl.pallas_call(
        kernel,
        out_shape=jax.ShapeDtypeStruct((N, Cout, num_tiles * tile), jnp.float32),
        grid_spec=pltpu.PrefetchScalarGridSpec(
            num_scalar_prefetch=0,
            grid=(N, num_tiles),
            in_specs=[
                pl.BlockSpec(memory_space=pl.ANY),        # raw HBM ref, manual DMA
                w_spec,
                pl.BlockSpec((Cout, 1), lambda n, t: (0, 0)),
            ],
            out_specs=pl.BlockSpec((1, Cout, tile), lambda n, t: (n, 0, t)),
            scratch_shapes=scratch,
        ),
        compiler_params=pltpu.CompilerParams(
            dimension_semantics=("parallel", "arbitrary"),
            vmem_limit_bytes=vmem_limit),
        cost_estimate=cost,
    )(x_flat, w_oper, shift)

    if not compact_output:
        # channel-major, Wp-strided rows + pipeline tail; compact once at the
        # network boundary when stacking conv_Ucolor blocks.
        return out_flat
    out = out_flat[:, :, :M].reshape(N, Cout, H, Wp)[:, :, :, :W]
    return out


# ------------------------------- validation ---------------------------------

def _reference_f32(x_nchw, params):
    """Pure-JAX f32 reference (conv + eval BN + ReLU) = PyTorch eval semantics."""
    eps = 1e-5
    y = lax.conv_general_dilated(
        x_nchw, params["conv_w"], window_strides=(1, 1),
        padding=((1, 1), (1, 1)),
        dimension_numbers=("NCHW", "OIHW", "NCHW"))
    y = y + params["conv_b"][None, :, None, None]
    scale = params["bn_gamma"] / jnp.sqrt(params["bn_var"] + eps)
    y = (y - params["bn_mean"][None, :, None, None]) * scale[None, :, None, None]
    y = y + params["bn_beta"][None, :, None, None]
    return jnp.maximum(y, 0.0)


def _reference_bf16(x_nchw, params):
    """Same math with the kernel's bf16 quantization of x and BN-folded weights."""
    eps = 1e-5
    scale = params["bn_gamma"] / jnp.sqrt(params["bn_var"] + eps)
    w_q = (params["conv_w"] * scale[:, None, None, None]
           ).astype(jnp.bfloat16).astype(jnp.float32)
    x_q = x_nchw.astype(jnp.bfloat16).astype(jnp.float32)
    y = lax.conv_general_dilated(
        x_q, w_q, window_strides=(1, 1), padding=((1, 1), (1, 1)),
        dimension_numbers=("NCHW", "OIHW", "NCHW"))
    shift = (params["conv_b"] - params["bn_mean"]) * scale + params["bn_beta"]
    y = y + shift[None, :, None, None]
    return jnp.maximum(y, 0.0)


def _make_params(key, Cin, Cout):
    kw, kb, kg, kbt, km, kv = jax.random.split(key, 6)
    return {
        "conv_w":  0.1 * jax.random.normal(kw, (Cout, Cin, 3, 3), jnp.float32),
        "conv_b":  0.05 * jax.random.normal(kb, (Cout,), jnp.float32),
        "bn_gamma": 1.0 + 0.1 * jax.random.normal(kg, (Cout,), jnp.float32),
        "bn_beta":  0.05 * jax.random.normal(kbt, (Cout,), jnp.float32),
        "bn_mean":  0.1 * jax.random.normal(km, (Cout,), jnp.float32),
        "bn_var":   1.0 + 0.1 * jnp.abs(jax.random.normal(kv, (Cout,), jnp.float32)),
    }


def _run_case(key, N, Cin, Cout, H, W):
    kx, kp = jax.random.split(key)
    x = jax.random.normal(kx, (N, Cin, H, W), jnp.float32)
    params = _make_params(kp, Cin, Cout)

    out = jax.block_until_ready(conv_ucolor_forward(x, params))
    ref_q = jax.block_until_ready(_reference_bf16(x, params))
    ref_f = jax.block_until_ready(_reference_f32(x, params))

    assert out.shape == (N, Cout, H, W), out.shape
    err_q = float(jnp.max(jnp.abs(out - ref_q)))   # structural correctness
    err_f = float(jnp.max(jnp.abs(out - ref_f)))   # bf16-operand numerics vs f32
    assert err_q < 5e-3, (err_q, err_f)
    assert err_f < 1.5e-1, (err_q, err_f)


if __name__ == "__main__":
    key = jax.random.PRNGKey(0)
    k1, k2 = jax.random.split(key)
    _run_case(k1, N=2, Cin=4, Cout=8, H=16, W=16)    # small-Cin im2col path
    _run_case(k2, N=1, Cin=32, Cout=16, H=8, W=8)    # large-Cin direct 9-dot path
    print("KERNEL_OK")
</pallas_src>

<mosaic_0001>
module attributes {stable_mosaic.version = 11 : i64} {
  func.func @_conv_kernel_im2col(%arg0: i32, %arg1: i32, %arg2: memref<2x8x640xbf16, #tpu.memory_space<any>>, %arg3: memref<8x72xbf16, #tpu.memory_space<vmem>>, %arg4: memref<8x1xf32, #tpu.memory_space<vmem>>, %arg5: memref<1x8x256xf32, #tpu.memory_space<vmem>>, %arg6: memref<2x8x384xbf16, #tpu.memory_space<vmem>>, %arg7: memref<2x!tpu.dma_semaphore, #tpu.memory_space<semaphore_mem>>, %arg8: memref<72x256xbf16, #tpu.memory_space<vmem>>) attributes {dimension_semantics = [#tpu.dimension_semantics<parallel>, #tpu.dimension_semantics<arbitrary>], iteration_bounds = array<i64: 2, 2>, scalar_prefetch = 0 : i64, scratch_operands = 3 : i64, tpu.core_type = #tpu.core_type<tc>, window_params = [{}, {pipeline_mode = #tpu.pipeline_mode<synchronous>, transform_indices = @transform_1, window_bounds = array<i64: 8, 72>}, {pipeline_mode = #tpu.pipeline_mode<synchronous>, transform_indices = @transform_2, window_bounds = array<i64: 8, 1>}, {transform_indices = @transform_3, window_bounds = array<i64: 1, 8, 256>}]} {
    %c2_i32 = arith.constant 2 : i32
    %c0_i32 = arith.constant 0 : i32
    %0 = arith.cmpi eq, %c2_i32, %c0_i32 : i32
    %c1_i32 = arith.constant 1 : i32
    %1 = arith.select %0, %c1_i32, %c2_i32 : i32
    %2 = arith.remsi %arg1, %1 : i32
    %c0_i32_0 = arith.constant 0 : i32
    %3 = arith.cmpi ne, %2, %c0_i32_0 : i32
    %c0_i32_1 = arith.constant 0 : i32
    %4 = arith.cmpi slt, %2, %c0_i32_1 : i32
    %c0_i32_2 = arith.constant 0 : i32
    %5 = arith.cmpi slt, %1, %c0_i32_2 : i32
    %6 = arith.xori %4, %5 : i1
    %7 = arith.andi %6, %3 : i1
    %8 = arith.addi %2, %1 : i32
    %9 = arith.select %7, %8, %2 : i32
    %c0_i32_3 = arith.constant 0 : i32
    %10 = arith.cmpi eq, %arg1, %c0_i32_3 : i32
    %11 = arith.extui %10 : i1 to i32
    %c0_i32_4 = arith.constant 0 : i32
    %12 = arith.cmpi ne, %11, %c0_i32_4 : i32
    scf.if %12 {
      %c256_i32_58 = arith.constant 256 : i32
      %72 = arith.muli %arg1, %c256_i32_58 : i32
      %73 = tpu.assume_multiple %72, 128 : i32
      %c0_i32_59 = arith.constant 0 : i32
      %74 = tpu.memref_slice %arg2[%arg0, %c0_i32_59, %73] : memref<2x8x640xbf16, #tpu.memory_space<any>> -> memref<1x8x384xbf16, #tpu.memory_space<any>>
      %75 = tpu.memref_squeeze %74 : memref<1x8x384xbf16, #tpu.memory_space<any>> -> memref<8x384xbf16, #tpu.memory_space<any>>
      %c0_i32_60 = arith.constant 0 : i32
      %c0_i32_61 = arith.constant 0 : i32
      %76 = tpu.memref_slice %arg6[%9, %c0_i32_60, %c0_i32_61] : memref<2x8x384xbf16, #tpu.memory_space<vmem>> -> memref<1x8x384xbf16, #tpu.memory_space<vmem>>
      %77 = tpu.memref_squeeze %76 : memref<1x8x384xbf16, #tpu.memory_space<vmem>> -> memref<8x384xbf16, #tpu.memory_space<vmem>>
      %78 = tpu.memref_slice %arg7[%9] : memref<2x!tpu.dma_semaphore, #tpu.memory_space<semaphore_mem>> -> memref<1x!tpu.dma_semaphore, #tpu.memory_space<semaphore_mem>>
      %79 = tpu.memref_squeeze %78 : memref<1x!tpu.dma_semaphore, #tpu.memory_space<semaphore_mem>> -> memref<!tpu.dma_semaphore, #tpu.memory_space<semaphore_mem>>
      tpu.enqueue_dma source(%75 : memref<8x384xbf16, #tpu.memory_space<any>>) target(%77 : memref<8x384xbf16, #tpu.memory_space<vmem>>) target_semaphore(%79 : memref<!tpu.dma_semaphore, #tpu.memory_space<semaphore_mem>>)
    } else {
    }
    %c1_i32_5 = arith.constant 1 : i32
    %13 = arith.addi %arg1, %c1_i32_5 : i32
    %c2_i32_6 = arith.constant 2 : i32
    %14 = arith.cmpi slt, %13, %c2_i32_6 : i32
    %15 = arith.extui %14 : i1 to i32
    %c0_i32_7 = arith.constant 0 : i32
    %16 = arith.cmpi ne, %15, %c0_i32_7 : i32
    scf.if %16 {
      %c1_i32_58 = arith.constant 1 : i32
      %72 = arith.addi %arg1, %c1_i32_58 : i32
      %c1_i32_59 = arith.constant 1 : i32
      %73 = arith.subi %c1_i32_59, %9 : i32
      %c256_i32_60 = arith.constant 256 : i32
      %74 = arith.muli %72, %c256_i32_60 : i32
      %75 = tpu.assume_multiple %74, 128 : i32
      %c0_i32_61 = arith.constant 0 : i32
      %76 = tpu.memref_slice %arg2[%arg0, %c0_i32_61, %75] : memref<2x8x640xbf16, #tpu.memory_space<any>> -> memref<1x8x384xbf16, #tpu.memory_space<any>>
      %77 = tpu.memref_squeeze %76 : memref<1x8x384xbf16, #tpu.memory_space<any>> -> memref<8x384xbf16, #tpu.memory_space<any>>
      %c0_i32_62 = arith.constant 0 : i32
      %c0_i32_63 = arith.constant 0 : i32
      %78 = tpu.memref_slice %arg6[%73, %c0_i32_62, %c0_i32_63] : memref<2x8x384xbf16, #tpu.memory_space<vmem>> -> memref<1x8x384xbf16, #tpu.memory_space<vmem>>
      %79 = tpu.memref_squeeze %78 : memref<1x8x384xbf16, #tpu.memory_space<vmem>> -> memref<8x384xbf16, #tpu.memory_space<vmem>>
      %80 = tpu.memref_slice %arg7[%73] : memref<2x!tpu.dma_semaphore, #tpu.memory_space<semaphore_mem>> -> memref<1x!tpu.dma_semaphore, #tpu.memory_space<semaphore_mem>>
      %81 = tpu.memref_squeeze %80 : memref<1x!tpu.dma_semaphore, #tpu.memory_space<semaphore_mem>> -> memref<!tpu.dma_semaphore, #tpu.memory_space<semaphore_mem>>
      tpu.enqueue_dma source(%77 : memref<8x384xbf16, #tpu.memory_space<any>>) target(%79 : memref<8x384xbf16, #tpu.memory_space<vmem>>) target_semaphore(%81 : memref<!tpu.dma_semaphore, #tpu.memory_space<semaphore_mem>>)
    } else {
    }
    %c256_i32 = arith.constant 256 : i32
    %17 = arith.muli %arg1, %c256_i32 : i32
    %18 = tpu.assume_multiple %17, 128 : i32
    %c0_i32_8 = arith.constant 0 : i32
    %19 = tpu.memref_slice %arg2[%arg0, %c0_i32_8, %18] : memref<2x8x640xbf16, #tpu.memory_space<any>> -> memref<1x8x384xbf16, #tpu.memory_space<any>>
    %20 = tpu.memref_squeeze %19 : memref<1x8x384xbf16, #tpu.memory_space<any>> -> memref<8x384xbf16, #tpu.memory_space<any>>
    %c0_i32_9 = arith.constant 0 : i32
    %c0_i32_10 = arith.constant 0 : i32
    %21 = tpu.memref_slice %arg6[%9, %c0_i32_9, %c0_i32_10] : memref<2x8x384xbf16, #tpu.memory_space<vmem>> -> memref<1x8x384xbf16, #tpu.memory_space<vmem>>
    %22 = tpu.memref_squeeze %21 : memref<1x8x384xbf16, #tpu.memory_space<vmem>> -> memref<8x384xbf16, #tpu.memory_space<vmem>>
    %23 = tpu.memref_slice %arg7[%9] : memref<2x!tpu.dma_semaphore, #tpu.memory_space<semaphore_mem>> -> memref<1x!tpu.dma_semaphore, #tpu.memory_space<semaphore_mem>>
    %24 = tpu.memref_squeeze %23 : memref<1x!tpu.dma_semaphore, #tpu.memory_space<semaphore_mem>> -> memref<!tpu.dma_semaphore, #tpu.memory_space<semaphore_mem>>
    tpu.wait_dma2 semaphore(%24 : memref<!tpu.dma_semaphore, #tpu.memory_space<semaphore_mem>>) src(%20 : memref<8x384xbf16, #tpu.memory_space<any>>) dst(%22 : memref<8x384xbf16, #tpu.memory_space<vmem>>)
    %c0_i32_11 = arith.constant 0 : i32
    %c0_i32_12 = arith.constant 0 : i32
    %25 = tpu.memref_slice %arg6[%9, %c0_i32_11, %c0_i32_12] : memref<2x8x384xbf16, #tpu.memory_space<vmem>> -> memref<1x8x384xbf16, #tpu.memory_space<vmem>>
    %26 = tpu.memref_squeeze %25 : memref<1x8x384xbf16, #tpu.memory_space<vmem>> -> memref<8x384xbf16, #tpu.memory_space<vmem>>
    %c0 = arith.constant 0 : index
    %c0_13 = arith.constant 0 : index
    %27 = vector.load %26[%c0, %c0_13] : memref<8x384xbf16, #tpu.memory_space<vmem>>, vector<8x256xbf16>
    %c0_14 = arith.constant 0 : index
    %c0_15 = arith.constant 0 : index
    %28 = vector.load %arg8[%c0_14, %c0_15] : memref<72x256xbf16, #tpu.memory_space<vmem>>, vector<8x256xbf16>
    tpu.vector_store %arg8[%c0_14, %c0_15], %27 {strides = array<i32>} : memref<72x256xbf16, #tpu.memory_space<vmem>>, vector<8x256xbf16>,
    %c0_i32_16 = arith.constant 0 : i32
    %c0_i32_17 = arith.constant 0 : i32
    %29 = tpu.memref_slice %arg6[%9, %c0_i32_16, %c0_i32_17] : memref<2x8x384xbf16, #tpu.memory_space<vmem>> -> memref<1x8x384xbf16, #tpu.memory_space<vmem>>
    %30 = tpu.memref_squeeze %29 : memref<1x8x384xbf16, #tpu.memory_space<vmem>> -> memref<8x384xbf16, #tpu.memory_space<vmem>>
    %c0_18 = arith.constant 0 : index
    %c1 = arith.constant 1 : index
    %31 = vector.load %30[%c0_18, %c1] : memref<8x384xbf16, #tpu.memory_space<vmem>>, vector<8x256xbf16>
    %c8 = arith.constant 8 : index
    %c0_19 = arith.constant 0 : index
    %32 = vector.load %arg8[%c8, %c0_19] : memref<72x256xbf16, #tpu.memory_space<vmem>>, vector<8x256xbf16>
    tpu.vector_store %arg8[%c8, %c0_19], %31 {strides = array<i32>} : memref<72x256xbf16, #tpu.memory_space<vmem>>, vector<8x256xbf16>,
    %c0_i32_20 = arith.constant 0 : i32
    %c0_i32_21 = arith.constant 0 : i32
    %33 = tpu.memref_slice %arg6[%9, %c0_i32_20, %c0_i32_21] : memref<2x8x384xbf16, #tpu.memory_space<vmem>> -> memref<1x8x384xbf16, #tpu.memory_space<vmem>>
    %34 = tpu.memref_squeeze %33 : memref<1x8x384xbf16, #tpu.memory_space<vmem>> -> memref<8x384xbf16, #tpu.memory_space<vmem>>
    %c0_22 = arith.constant 0 : index
    %c2 = arith.constant 2 : index
    %35 = vector.load %34[%c0_22, %c2] : memref<8x384xbf16, #tpu.memory_space<vmem>>, vector<8x256xbf16>
    %c16 = arith.constant 16 : index
    %c0_23 = arith.constant 0 : index
    %36 = vector.load %arg8[%c16, %c0_23] : memref<72x256xbf16, #tpu.memory_space<vmem>>, vector<8x256xbf16>
    tpu.vector_store %arg8[%c16, %c0_23], %35 {strides = array<i32>} : memref<72x256xbf16, #tpu.memory_space<vmem>>, vector<8x256xbf16>,
    %c0_i32_24 = arith.constant 0 : i32
    %c0_i32_25 = arith.constant 0 : i32
    %37 = tpu.memref_slice %arg6[%9, %c0_i32_24, %c0_i32_25] : memref<2x8x384xbf16, #tpu.memory_space<vmem>> -> memref<1x8x384xbf16, #tpu.memory_space<vmem>>
    %38 = tpu.memref_squeeze %37 : memref<1x8x384xbf16, #tpu.memory_space<vmem>> -> memref<8x384xbf16, #tpu.memory_space<vmem>>
    %c0_26 = arith.constant 0 : index
    %c18 = arith.constant 18 : index
    %39 = vector.load %38[%c0_26, %c18] : memref<8x384xbf16, #tpu.memory_space<vmem>>, vector<8x256xbf16>
    %c24 = arith.constant 24 : index
    %c0_27 = arith.constant 0 : index
    %40 = vector.load %arg8[%c24, %c0_27] : memref<72x256xbf16, #tpu.memory_space<vmem>>, vector<8x256xbf16>
    tpu.vector_store %arg8[%c24, %c0_27], %39 {strides = array<i32>} : memref<72x256xbf16, #tpu.memory_space<vmem>>, vector<8x256xbf16>,
    %c0_i32_28 = arith.constant 0 : i32
    %c0_i32_29 = arith.constant 0 : i32
    %41 = tpu.memref_slice %arg6[%9, %c0_i32_28, %c0_i32_29] : memref<2x8x384xbf16, #tpu.memory_space<vmem>> -> memref<1x8x384xbf16, #tpu.memory_space<vmem>>
    %42 = tpu.memref_squeeze %41 : memref<1x8x384xbf16, #tpu.memory_space<vmem>> -> memref<8x384xbf16, #tpu.memory_space<vmem>>
    %c0_30 = arith.constant 0 : index
    %c19 = arith.constant 19 : index
    %43 = vector.load %42[%c0_30, %c19] : memref<8x384xbf16, #tpu.memory_space<vmem>>, vector<8x256xbf16>
    %c32 = arith.constant 32 : index
    %c0_31 = arith.constant 0 : index
    %44 = vector.load %arg8[%c32, %c0_31] : memref<72x256xbf16, #tpu.memory_space<vmem>>, vector<8x256xbf16>
    tpu.vector_store %arg8[%c32, %c0_31], %43 {strides = array<i32>} : memref<72x256xbf16, #tpu.memory_space<vmem>>, vector<8x256xbf16>,
    %c0_i32_32 = arith.constant 0 : i32
    %c0_i32_33 = arith.constant 0 : i32
    %45 = tpu.memref_slice %arg6[%9, %c0_i32_32, %c0_i32_33] : memref<2x8x384xbf16, #tpu.memory_space<vmem>> -> memref<1x8x384xbf16, #tpu.memory_space<vmem>>
    %46 = tpu.memref_squeeze %45 : memref<1x8x384xbf16, #tpu.memory_space<vmem>> -> memref<8x384xbf16, #tpu.memory_space<vmem>>
    %c0_34 = arith.constant 0 : index
    %c20 = arith.constant 20 : index
    %47 = vector.load %46[%c0_34, %c20] : memref<8x384xbf16, #tpu.memory_space<vmem>>, vector<8x256xbf16>
    %c40 = arith.constant 40 : index
    %c0_35 = arith.constant 0 : index
    %48 = vector.load %arg8[%c40, %c0_35] : memref<72x256xbf16, #tpu.memory_space<vmem>>, vector<8x256xbf16>
    tpu.vector_store %arg8[%c40, %c0_35], %47 {strides = array<i32>} : memref<72x256xbf16, #tpu.memory_space<vmem>>, vector<8x256xbf16>,
    %c0_i32_36 = arith.constant 0 : i32
    %c0_i32_37 = arith.constant 0 : i32
    %49 = tpu.memref_slice %arg6[%9, %c0_i32_36, %c0_i32_37] : memref<2x8x384xbf16, #tpu.memory_space<vmem>> -> memref<1x8x384xbf16, #tpu.memory_space<vmem>>
    %50 = tpu.memref_squeeze %49 : memref<1x8x384xbf16, #tpu.memory_space<vmem>> -> memref<8x384xbf16, #tpu.memory_space<vmem>>
    %c0_38 = arith.constant 0 : index
    %c36 = arith.constant 36 : index
    %51 = vector.load %50[%c0_38, %c36] : memref<8x384xbf16, #tpu.memory_space<vmem>>, vector<8x256xbf16>
    %c48 = arith.constant 48 : index
    %c0_39 = arith.constant 0 : index
    %52 = vector.load %arg8[%c48, %c0_39] : memref<72x256xbf16, #tpu.memory_space<vmem>>, vector<8x256xbf16>
    tpu.vector_store %arg8[%c48, %c0_39], %51 {strides = array<i32>} : memref<72x256xbf16, #tpu.memory_space<vmem>>, vector<8x256xbf16>,
    %c0_i32_40 = arith.constant 0 : i32
    %c0_i32_41 = arith.constant 0 : i32
    %53 = tpu.memref_slice %arg6[%9, %c0_i32_40, %c0_i32_41] : memref<2x8x384xbf16, #tpu.memory_space<vmem>> -> memref<1x8x384xbf16, #tpu.memory_space<vmem>>
    %54 = tpu.memref_squeeze %53 : memref<1x8x384xbf16, #tpu.memory_space<vmem>> -> memref<8x384xbf16, #tpu.memory_space<vmem>>
    %c0_42 = arith.constant 0 : index
    %c37 = arith.constant 37 : index
    %55 = vector.load %54[%c0_42, %c37] : memref<8x384xbf16, #tpu.memory_space<vmem>>, vector<8x256xbf16>
    %c56 = arith.constant 56 : index
    %c0_43 = arith.constant 0 : index
    %56 = vector.load %arg8[%c56, %c0_43] : memref<72x256xbf16, #tpu.memory_space<vmem>>, vector<8x256xbf16>
    tpu.vector_store %arg8[%c56, %c0_43], %55 {strides = array<i32>} : memref<72x256xbf16, #tpu.memory_space<vmem>>, vector<8x256xbf16>,
    %c0_i32_44 = arith.constant 0 : i32
    %c0_i32_45 = arith.constant 0 : i32
    %57 = tpu.memref_slice %arg6[%9, %c0_i32_44, %c0_i32_45] : memref<2x8x384xbf16, #tpu.memory_space<vmem>> -> memref<1x8x384xbf16, #tpu.memory_space<vmem>>
    %58 = tpu.memref_squeeze %57 : memref<1x8x384xbf16, #tpu.memory_space<vmem>> -> memref<8x384xbf16, #tpu.memory_space<vmem>>
    %c0_46 = arith.constant 0 : index
    %c38 = arith.constant 38 : index
    %59 = vector.load %58[%c0_46, %c38] : memref<8x384xbf16, #tpu.memory_space<vmem>>, vector<8x256xbf16>
    %c64 = arith.constant 64 : index
    %c0_47 = arith.constant 0 : index
    %60 = vector.load %arg8[%c64, %c0_47] : memref<72x256xbf16, #tpu.memory_space<vmem>>, vector<8x256xbf16>
    tpu.vector_store %arg8[%c64, %c0_47], %59 {strides = array<i32>} : memref<72x256xbf16, #tpu.memory_space<vmem>>, vector<8x256xbf16>,
    %c0_48 = arith.constant 0 : index
    %c0_49 = arith.constant 0 : index
    %61 = vector.load %arg3[%c0_48, %c0_49] : memref<8x72xbf16, #tpu.memory_space<vmem>>, vector<8x72xbf16>
    %c0_50 = arith.constant 0 : index
    %c0_51 = arith.constant 0 : index
    %62 = vector.load %arg8[%c0_50, %c0_51] : memref<72x256xbf16, #tpu.memory_space<vmem>>, vector<72x256xbf16>
    %cst = arith.constant dense<0.000000e+00> : vector<8x256xf32>
    %63 = tpu.matmul %61, %62, %cst {dimension_numbers = #tpu.dot_dimension_numbers<[1], [0], [0], [1], [0, 0, 1, 1], [], []>} : vector<8x72xbf16>, vector<72x256xbf16>, vector<8x256xf32> -> vector<8x256xf32>
    %c0_52 = arith.constant 0 : index
    %c0_53 = arith.constant 0 : index
    %64 = vector.load %arg4[%c0_52, %c0_53] : memref<8x1xf32, #tpu.memory_space<vmem>>, vector<8x1xf32>
    %65 = vector.broadcast %64 : vector<8x1xf32> to vector<8x256xf32>
    %66 = arith.addf %63, %65 : vector<8x256xf32>
    %cst_54 = arith.constant 0.000000e+00 : f32
    %67 = vector.broadcast %cst_54 : f32 to vector<8x256xf32>
    %68 = arith.maximumf %66, %67 : vector<8x256xf32>
    %c0_55 = arith.constant 0 : index
    %c0_56 = arith.constant 0 : index
    %c0_57 = arith.constant 0 : index
    %69 = vector.load %arg5[%c0_55, %c0_56, %c0_57] : memref<1x8x256xf32, #tpu.memory_space<vmem>>, vector<1x8x256xf32>
    %70 = vector.shape_cast %69 : vector<1x8x256xf32> to vector<8x256xf32>
    %71 = vector.shape_cast %68 : vector<8x256xf32> to vector<1x8x256xf32>
    tpu.vector_store %arg5[%c0_55, %c0_56, %c0_57], %71 {strides = array<i32>} : memref<1x8x256xf32, #tpu.memory_space<vmem>>, vector<1x8x256xf32>,
    return
  }
  func.func @transform_1(%arg0: i32, %arg1: i32) -> (i32, i32) {
    %c0_i32 = arith.constant 0 : i32
    %c0_i32_0 = arith.constant 0 : i32
    %c0_i32_1 = arith.constant 0 : i32
    return %c0_i32, %c0_i32_0 : i32, i32
  }
  func.func @transform_2(%arg0: i32, %arg1: i32) -> (i32, i32) {
    %c0_i32 = arith.constant 0 : i32
    %c0_i32_0 = arith.constant 0 : i32
    %c0_i32_1 = arith.constant 0 : i32
    return %c0_i32, %c0_i32_0 : i32, i32
  }
  func.func @transform_3(%arg0: i32, %arg1: i32) -> (i32, i32, i32) {
    %c0_i32 = arith.constant 0 : i32
    %c0_i32_0 = arith.constant 0 : i32
    return %arg0, %c0_i32, %arg1 : i32, i32, i32
  }
}

</mosaic_0001>

<bundles_post_ra>
// kernel: tpu_custom_call.1
= control target key start
LH: loop header
LB: loop body
LE: loop exit
PB: predicated region body
PF: predicated region fallthrough
CT: control target
= control target key end

     0   :  { %8 = vsyncpa [#allocation6], 0  ;;  %s1147_s0 = inlined_call_operand.hbm [shape: bf16[2,8,640], index: 0, kind: input, shape index: {}]   ;;  %s1148_s1 = inlined_call_operand.vmem [shape: bf16[8,72], index: 1, kind: input, shape index: {}]   ;;  %s1149_s2 = inlined_call_operand.vmem [shape: f32[8,1], index: 2, kind: input, shape index: {}]   ;;  %s1150_s3 = inlined_call_operand.hbm [shape: f32[2,8,512], index: 3, kind: output, shape index: {}]  }
   0x1   :  { %10 = vsyncpa [#allocation6 + $0x1], 0  ;;  %s876_s12 = smov 0   ;;  %s878_s13 = smov 0  }
   0x2   :  { %s880_s14 = smov 0   ;;  %s882_s15 = smov 0  }
   0x3   :  { %s884_s16 = smov 0   ;;  %s886_s17 = smov 0  }
   0x4   :  { %s888_s18 = smov 0   ;;  %s890_s19 = smov 0  }
   0x5 LB: > { %1163 = sst [smem:[#allocation15_spill]] %s815_s12  ;;  %s562_s20 = sadd.s32 4294967295, %s843_s19   ;;  %s843_s19 = sphi %s890_s19, %s16_s19   ;;  %s839_s18 = sphi %s888_s18, %s1187_s18   ;;  %s835_s17 = sphi %s886_s17, %s1186_s17   ;;  %s831_s16 = sphi %s884_s16, %s1185_s16   ;;  %s827_s15 = sphi %s882_s15, %s1184_s15   ;;  %s823_s14 = sphi %s880_s14, %s1183_s14   ;;  %s819_s13 = sphi %s878_s13, %s1189_s13   ;;  %s815_s12 = sphi %s876_s12, %s1188_s12  }
   0x6   : > { %1164 = sst [smem:[#allocation16_spill]] %s823_s14  ;;  %s563_s21 = sadd.s32 4294967294, %s843_s19  }
   0x7   : > { %1165 = sst [smem:[#allocation17_spill]] %s835_s17  ;;  %s25_s22 = sadd.s32 1, %s835_s17 }
   0x8   : > { %1166 = sst [smem:[#allocation18_spill]] %s839_s18  ;;  %p26_p0 = scmp.ge.s32.totalorder %s25_s22, 2 }
   0x9   : > { %s28_s23 = sadd.s32 1, %s839_s18  ;;  %p89_p1 = scmp.ne.s32.totalorder %s823_s14, %s819_s13 }
   0xa   : > { %p90_p2 = scmp.eq.s32.totalorder %s562_s20, 3  ;;  %s1191_s22 = smov (%p26_p0, %s25_s22), 0 }
   0xb   : > { %1167 = sst [smem:[#allocation19_spill]] %s1191_s22  ;;  %s1193_s23 = smov (!%p26_p0, %s28_s23), %s839_s18 }
   0xc   : > { %s75_s24 = ssub.s32 %s835_s17, %s1191_s22  ;;  %p927_p3 = por %p90_p2, %p89_p1 }
   0xd   : > { %p30_p4 = scmp.ge.s32.totalorder %s1193_s23, 2  ;;  %p95_p5 = scmp.ne.s32.totalorder %s819_s13, %s815_s12 }
   0xe   : > { %s1168_s25 = scalar_select %p927_p3, 1, 0 }
   0xf   : > { %p96_p6 = scmp.eq.s32.totalorder %s563_s21, 3  ;;  %p565_p7 = scmp.ge.s32.totalorder %s843_s19, 1 }
  0x10   : > { %s1195_s23 = smov (%p30_p4, %s1193_s23), 0  ;;  %p120_p9 = scmp.lt.s32.totalorder %s843_s19, 5 }
  0x11   : > { %1169 = sst [smem:[#allocation20_spill]] %s1195_s23  ;;  %p936_p8 = por %p96_p6, %p95_p5 }
  0x12   : > { %s74_s27 = ssub.s32 %s839_s18, %s1195_s23  ;;  %s79_s28 = sadd.s32 1, %s823_s14 }
  0x13   : > { %s1170_s26 = scalar_select %p936_p8, 1, 0 }
  0x14   : > { %s76_s29 = sor.u32 %s75_s24, %s74_s27  ;;  %p121_p10 = pnand %p565_p7, %p120_p9 }
  0x15   : > { %1171 = sst [smem:[#allocation21_spill]] %s1170_s26  ;;  %p77_p11 = scmp.eq.s32.totalorder %s76_s29, 0 }
  0x16   : > { %124 = sbr.rel (%p121_p10) target bundleno = 473 (0x1d9), region = 28  ;;  %s1151_s4 = sand.u32 (!%p121_p10), 1, %s819_s13  }
  0x17   : > { %s945_s30 = scalar_select %p77_p11, %s823_s14, %s79_s28  }
  0x18   : > { %p139_p12 = scmp.lt.s32.totalorder (!%p121_p10), %s827_s15, 0  ;;  %s951_s5 = sshll.u32 (!%p121_p10), %s1151_s4, 4 }
  0x19   : > { %1172 = sst [smem:[#allocation22_spill]] %s945_s30  ;;  %s140_s6 = ssub.s32 (!%p121_p10), 0, %s827_s15 }
  0x1a   : > { %s567_s7 = smin.u32 (!%p121_p10), %s827_s15, %s140_s6  ;;  %p614_p13 = scmp.eq.s32.totalorder (!%p121_p10), %s827_s15, 0 }
  0x1b   : > { %s142_s8 = sand.u32 (!%p121_p10), 1, %s567_s7   ;;  %s571_s10 = sshll.u32 (!%p121_p10), %s827_s15, 8 }
  0x1c   : > { %s143_s9 = ssub.s32 (!%p121_p10), 0, %s142_s8  ;;  %s1153_s11 = smul.u32 (!%p121_p10), 5, %s831_s16 }
  0x1d   : > { %s1197_s9 = smov (!%p139_p12, %s143_s9), %s142_s8  ;;  %s156_s21 = sshra.s32 %s571_s10, 7 }
  0x1e   : > { %p569_p0 = scmp.lt.s32.totalorder %s1197_s9, 0  ;;  %s149_s20 = sadd.s32 2, %s1197_s9 }
  0x1f   : > { %s958_s24 = sadd.s32 256, %s571_s10  ;;  %s159_s27 = sadd.s32 %s1153_s11, %s156_s21 }
  0x20   : > { %s1199_s20 = smov (!%p569_p0, %s149_s20), %s1197_s9  ;;  %s177_s28 = sadd.s32 1, %s827_s15 }
  0x21   : > { %s572_s29 = sshll.u32 %s159_s27, 6  ;;  %s599_s6 = smul.u32 12, %s1199_s20 }
  0x22   : > { %s969_s4 = scalar_lea.hbm %s1147_s0, %s572_s29  ;;  %p974_p1 = scmp.lt.s32.totalorder %s177_s28, 2 }
  0x23   : > { %s971_s10 = scalar_lea.vmem [#allocation2], %s599_s6  ;;  %s182_s21 = ssub.s32 1, %s1199_s20 }
  0x24   : > { %s173_s9 = sshll.u32 %s971_s10, 4  ;;  %s982_s27 = scalar_lea.sflag [#allocation3], %s1199_s20  ;;  %s978_s9 = int_to_ptr.vmem [resolvable:$true] %s173_s9 }
  0x25   : > { %s691_s7 = scalar_lea.hbm %s969_s4, 192  ;;  %s1157_s6 = scalar_lea.hbm %s1147_s0, 640 }
  0x26   : > { %p692_p2 = scmp.ne.s32.totalorder %s969_s4, %s691_s7  ;;  %p696_p6 = scmp.lt.u32.totalorder %s969_s4, %s1147_s0 }
  0x27   : > { %p697_p7 = scmp.lt.u32.totalorder %s1157_s6, %s691_s7  ;;  %p699_p10 = scmp.lt.u32.totalorder %s691_s7, %s969_s4 }
  0x28   : > { %p693_p4 = pnand %p692_p2, %p614_p13 }
  0x29   : > { %p698_p9 = por %p697_p7, %p696_p6 }
  0x2a   : > { %p694_p5 = pneg %p693_p4 }
  0x2b   : > { %p700_p11 = por %p699_p10, %p698_p9 }
  0x2d   : > { %p701_p12 = pnand %p700_p11, %p694_p5 }
  0x2f   : > { %704 = shalt.err (!%p701_p12)  }
  0x30   : > { %s705_s29 = scalar_lea.vmem %s978_s9, 192  ;;  %s845_s22 = smov [#allocation2]  }
  0x31   : > { %p706_p0 = scmp.ne.s32.totalorder %s978_s9, %s705_s29  ;;  %s709_s11 = sshll.u32 %s845_s22, 4  ;;  %s1004_s11 = int_to_ptr.vmem [resolvable:$false] %s709_s11 }
  0x32   : > { %s1156_s18 = scalar_lea.vmem %s1004_s11, 384  ;;  %p712_p6 = scmp.lt.s32.totalorder %s978_s9, %s1004_s11 }
  0x33   : > { %p707_p2 = pnand %p706_p0, %p614_p13  ;;  %p713_p5 = scmp.lt.s32.totalorder %s1156_s18, %s705_s29 }
  0x35   : > { %p708_p4 = pneg %p707_p2  ;;  %p714_p7 = por %p713_p5, %p712_p6 }
  0x37   : > { %p715_p9 = pnand %p714_p7, %p708_p4 }
  0x39   : > { %718 = shalt.err (!%p715_p9)  }
  0x3a   : > { %605 = dma.hbm_to_vmem [thread:$0]  (%p614_p13), %s969_s4, 192, %s978_s9, %s982_s27 }
  0x3b   : > { %s184_s7 = sshra.s32 %s958_s24, 7  ;;  %s602_s8 = smul.u32 12, %s182_s21 }
  0x3c   : > { %s1174_s28 = smul.u32 5, %s831_s16  ;;  %s193_s26 = scalar_lea.sflag [#allocation3], %s182_s21 }
  0x3d   : > { %s192_s30 = scalar_lea.vmem [#allocation2], %s602_s8 }
  0x3e   : > { %s187_s22 = sadd.s32 %s184_s7, %s1174_s28  ;;  %s201_s14 = sshll.u32 %s192_s30, 4  ;;  %s202_s14 = int_to_ptr.vmem [resolvable:$true] %s201_s14 }
  0x3f   : > { %s576_s29 = sshll.u32 %s187_s22, 6  ;;  %s1175_s28 = scalar_lea.hbm %s1147_s0, 640 }
  0x40   : > { %s189_s17 = scalar_lea.hbm %s1147_s0, %s576_s29 }
  0x41   : > { %s719_s12 = scalar_lea.hbm %s189_s17, 192  ;;  %p724_p12 = scmp.lt.u32.totalorder %s189_s17, %s1147_s0 }
  0x42   : > { %p720_p10 = scmp.ne.s32.totalorder %s189_s17, %s719_s12  ;;  %p725_p0 = scmp.lt.u32.totalorder %s1175_s28, %s719_s12 }
  0x43   : > { %p727_p4 = scmp.lt.u32.totalorder %s719_s12, %s189_s17 }
  0x44   : > { %p721_p11 = pnand %p720_p10, %p974_p1  ;;  %p726_p2 = por %p725_p0, %p724_p12 }
  0x46   : > { %p722_p13 = pneg %p721_p11  ;;  %p728_p6 = por %p727_p4, %p726_p2 }
  0x48   : > { %p729_p5 = pnand %p728_p6, %p722_p13 }
  0x4a   : > { %732 = shalt.err (!%p729_p5)  }
  0x4b   : > { %s733_s30 = scalar_lea.vmem %s202_s14, 192  ;;  %p740_p11 = scmp.lt.s32.totalorder %s202_s14, %s1004_s11 }
  0x4c   : > { %p734_p7 = scmp.ne.s32.totalorder %s202_s14, %s733_s30  ;;  %s1176_s20 = scalar_lea.vmem %s1004_s11, 384 }
  0x4d   : > { %p741_p8 = scmp.lt.s32.totalorder %s1176_s20, %s733_s30 }
  0x4e   : > { %p735_p9 = pnand %p734_p7, %p974_p1 }
  0x4f   : > { %p742_p3 = por %p741_p8, %p740_p11 }
  0x50   : > { %p736_p10 = pneg %p735_p9 }
  0x52   : > { %p743_p0 = pnand %p742_p3, %p736_p10 }
  0x54   : > { %746 = shalt.err (!%p743_p0)  }
  0x55   : > { %607 = dma.hbm_to_vmem [thread:$0]  (%p974_p1), %s189_s17, 192, %s202_s14, %s193_s26 }
  0x56   : > { %s1043_s12 = scalar_lea.vmem [#allocation5], %s951_s5 }
  0x57   : > { %807 = dma.done.wait %s982_s27, 192 }
  0x58   : > { %808 = vsyncadd %s982_s27, 4294967104  ;;  %v1048_v0 = vld [vmem:[%s971_s10] sm:$0xff]  ;;  %s846_s21 = smov 126   ;;  %s847_s23 = smov 127   ;;  %v233_v1 = vld [vmem:[%s971_s10 + $0x8] sm:$0xf] }
  0x59   : > { %236 = vrot.lane.b32.xlu1 %v1048_v0, %s846_s21  ;;  %220 = vrot.lane.b32.xlu0 %v1048_v0, %s847_s23  ;;  %v217_v2 = vld [vmem:[%s971_s10 + $0x8] sm:$0xf]  ;;  %s848_s14 = smov 110   ;;  %s849_s17 = smov 109   ;;  %v852_v8 = vmov 0   ;;  %v347_v10 = vld [vmem:[%s1149_s2] sm:$0xff] }
  0x5a   : > { %v248_v3 = vld [vmem:[%s971_s10 + $0x8] sm:$0xf]  ;;  %s850_s26 = smov 108   ;;  %s851_s5 = smov 92   ;;  %441 = vmatprep.mubr.bf16.mxu0 %v852_v8  ;;  %690 = vset.pattern.permute.xlu0 %v852_v8  ;;  %vm226_vm0 = vcmask 1043456   ;;  %vm228_vm1 = vcmask 1039360  }
  0x5b   : > { %v263_v4 = vld [vmem:[%s971_s10 + $0x8] sm:$0xf]  ;;  %s853_s27 = smov 91   ;;  %s854_s6 = smov 90   ;;  %vm243_vm2 = vcmask 1031168   ;;  %vm258_vm3 = vcmask 900096  }
  0x5c   : > { %v278_v5 = vld [vmem:[%s971_s10 + $0x8] sm:$0xf]  ;;  %vm273_vm4 = vcmask 891904   ;;  %vm288_vm5 = vcmask 883712   ;;  %vm303_vm6 = vcmask 752640   ;;  %vm318_vm7 = vcmask 744448  }
  0x5d   : > { %238 = vrot.lane.b32.xlu1 %v233_v1, %s846_s21  ;;  %222 = vrot.lane.b32.xlu0 %v217_v2, %s847_s23  ;;  %v293_v6 = vld [vmem:[%s971_s10 + $0x8] sm:$0xf]  ;;  %vm333_vm8 = vcmask 736256   ;;  %vm398_vm9 = vcmask 588800   ;;  %s592_s22 = sshll.u32 %s827_s15, 1  ;;  %s593_s29 = sshll.u32 %s831_s16, 2 }
  0x5e   : > { %v308_v7 = vld [vmem:[%s971_s10 + $0x8] sm:$0xf]  ;;  %s467_s4 = sadd.s32 %s593_s29, %s592_s22  ;;  %s471_s9 = sshll.u32 %s1043_s12, 4  ;;  %s1092_s9 = int_to_ptr.vmem [resolvable:$true] %s471_s9 }
  0x5f   : > { %v323_v9 = vld [vmem:[%s971_s10 + $0x8] sm:$0xf]  ;;  %s594_s24 = sshll.u32 %s467_s4, 7  ;;  %s1177_s16 = sand.u32 1, %s819_s13  }
  0x60   : > { %s1090_s15 = scalar_lea.hbm %s1150_s3, %s594_s24  ;;  %s455_s30 = scalar_lea.sflag [#allocation6], %s1177_s16 }
  0x61   : > { %253 = vrot.lane.b32.xlu1 %v248_v3, %s848_s14  ;;  %251 = vrot.lane.b32.xlu0 %v1048_v0, %s848_s14  ;;  %s747_s20 = scalar_lea.vmem %s1092_s9, 256  ;;  %p1178_p8 = scmp.ne.s32.totalorder %s1168_s25, 0 }
  0x62   : > { %p748_p3 = scmp.ne.s32.totalorder %s1092_s9, %s747_s20  ;;  %s855_s21 = smov [#allocation5]  }
  0x63   : > { %s751_s23 = sshll.u32 %s855_s21, 4  ;;  %s752_s23 = int_to_ptr.vmem [resolvable:$false] %s751_s23 }
  0x64   : > { %p749_p1 = pnand %p748_p3, %p1178_p8  ;;  %s753_s14 = scalar_lea.vmem %s752_s23, 512 }
  0x65   : > { %268 = vrot.lane.b32.xlu1 %v263_v4, %s849_s17  ;;  %266 = vrot.lane.b32.xlu0 %v1048_v0, %s849_s17  ;;  %p754_p12 = scmp.lt.s32.totalorder %s1092_s9, %s752_s23  ;;  %p755_p2 = scmp.lt.s32.totalorder %s753_s14, %s747_s20 }
  0x66   : > { %p750_p13 = pneg %p749_p1 }
  0x67   : > { %p756_p4 = por %p755_p2, %p754_p12 }
  0x69   : > { %283 = vrot.lane.b32.xlu1 %v278_v5, %s850_s26  ;;  %281 = vrot.lane.b32.xlu0 %v1048_v0, %s850_s26  ;;  %p757_p6 = pnand %p756_p4, %p750_p13 }
  0x6d   : > { %298 = vrot.lane.b32.xlu1 %v293_v6, %s851_s5  ;;  %296 = vrot.lane.b32.xlu0 %v1048_v0, %s851_s5  ;;  %v337_v6 = vld [vmem:[%s1148_s1] sm:$0xf] }
  0x71   : > { %313 = vrot.lane.b32.xlu1 %v308_v7, %s853_s27  ;;  %311 = vrot.lane.b32.xlu0 %v1048_v0, %s853_s27 }
  0x75   : > { %328 = vrot.lane.b32.xlu1 %v323_v9, %s854_s6  ;;  %326 = vrot.lane.b32.xlu0 %v1048_v0, %s854_s6 }
  0x79   : > { %350 = vperm.xlu0 %690, %v347_v10  }
  0xcb   : > { %v237_v11 = vpop.permute.xlu1 %236  ;;  %v221_v12 = vpop.permute.xlu0 %220 }
  0xcc   : > { %v224_v15 = vrot.slane %v221_v12, 4  ;;  %v240_v18 = vrot.slane %v237_v11, 4 }
  0xcf   : > { %v239_v13 = vpop.permute.xlu1 %238  ;;  %v223_v14 = vpop.permute.xlu0 %222 }
  0xd0   : > { %v241_v16 = vrot.slane %v239_v13, 4  ;;  %v225_v17 = vrot.slane %v223_v14, 4 }
  0xd2   : > { %v227_v19 = vsel %vm226_vm0, %v224_v15, %v225_v17  ;;  %v242_v20 = vsel %vm226_vm0, %v240_v18, %v241_v16 }
  0xd3   : > { %v254_v21 = vpop.permute.xlu1 %253  ;;  %v252_v22 = vpop.permute.xlu0 %251  ;;  %v229_v23 = vsel %vm228_vm1, %v221_v12, %v227_v19  ;;  %v244_v29 = vsel %vm243_vm2, %v237_v11, %v242_v20 }
  0xd4   : > { %v256_v24 = vrot.slane %v254_v21, 4  ;;  %v255_v25 = vrot.slane %v252_v22, 4  ;;  %v580_v26 = vcombine.high %v1048_v0, %v229_v23  ;;  %v579_v27 = vcombine.low %v1048_v0, %v229_v23 }
  0xd6   : > { %v257_v28 = vsel %vm226_vm0, %v255_v25, %v256_v24  ;;  %409 = vmatprep.subr.bf16.mxu0 %v580_v26 }
  0xd7   : > { %v259_v30 = vsel %vm258_vm3, %v252_v22, %v257_v28  ;;  %v269_v31 = vpop.permute.xlu1 %268  ;;  %v267_v32 = vpop.permute.xlu0 %266  ;;  %410 = vmatpush1.bf16.msra.mxu0 %v579_v27 }
  0xd8   : > { %v581_v33 = vcombine.low %v244_v29, %v259_v30  ;;  %v582_v34 = vcombine.high %v244_v29, %v259_v30  ;;  %v271_v35 = vrot.slane %v269_v31, 4  ;;  %v270_v36 = vrot.slane %v267_v32, 4 }
  0xda   : > { %411 = vmatprep.subr.bf16.mxu0 %v582_v34  ;;  %v272_v39 = vsel %vm226_vm0, %v270_v36, %v271_v35 }
  0xdb   : > { %v284_v37 = vpop.permute.xlu1 %283  ;;  %v282_v38 = vpop.permute.xlu0 %281  ;;  %412 = vmatpush1.bf16.msra.mxu0 %v581_v33  ;;  %v274_v43 = vsel %vm273_vm4, %v267_v32, %v272_v39 }
  0xdc   : > { %v286_v40 = vrot.slane %v284_v37, 4  ;;  %v285_v41 = vrot.slane %v282_v38, 4 }
  0xde   : > { %v287_v42 = vsel %vm226_vm0, %v285_v41, %v286_v40 }
  0xdf   : > { %v289_v44 = vsel %vm288_vm5, %v282_v38, %v287_v42  ;;  %v299_v45 = vpop.permute.xlu1 %298  ;;  %v297_v46 = vpop.permute.xlu0 %296 }
  0xe0   : > { %v583_v47 = vcombine.low %v274_v43, %v289_v44  ;;  %v584_v48 = vcombine.high %v274_v43, %v289_v44  ;;  %v301_v49 = vrot.slane %v299_v45, 4  ;;  %v300_v50 = vrot.slane %v297_v46, 4 }
  0xe2   : > { %413 = vmatprep.subr.bf16.mxu0 %v584_v48  ;;  %v302_v53 = vsel %vm226_vm0, %v300_v50, %v301_v49 }
  0xe3   : > { %v314_v51 = vpop.permute.xlu1 %313  ;;  %v312_v52 = vpop.permute.xlu0 %311  ;;  %414 = vmatpush1.bf16.msra.mxu0 %v583_v47  ;;  %v304_v57 = vsel %vm303_vm6, %v297_v46, %v302_v53 }
  0xe4   : > { %v316_v54 = vrot.slane %v314_v51, 4  ;;  %v315_v55 = vrot.slane %v312_v52, 4 }
  0xe6   : > { %v317_v56 = vsel %vm226_vm0, %v315_v55, %v316_v54 }
  0xe7   : > { %v319_v58 = vsel %vm318_vm7, %v312_v52, %v317_v56  ;;  %v329_v59 = vpop.permute.xlu1 %328  ;;  %v327_v60 = vpop.permute.xlu0 %326 }
  0xe8   : > { %v585_v61 = vcombine.low %v304_v57, %v319_v58  ;;  %v586_v62 = vcombine.high %v304_v57, %v319_v58  ;;  %v331_v63 = vrot.slane %v329_v59, 4  ;;  %v330_v0 = vrot.slane %v327_v60, 4 }
  0xea   : > { %v332_v1 = vsel %vm226_vm0, %v330_v0, %v331_v63  ;;  %415 = vmatprep.subr.bf16.mxu0 %v586_v62 }
  0xeb   : > { %v334_v2 = vsel %vm333_vm8, %v327_v60, %v332_v1  ;;  %416 = vmatpush1.bf16.msra.mxu0 %v585_v61 }
  0xec   : > { %v587_v3 = vcombine.low %v334_v2, %v334_v2  ;;  %v588_v4 = vcombine.high %v334_v2, %v334_v2 }
  0xee   : > { %589 = vmatprep.subr.msk.bf16.mxu0 %vm226_vm0, %v588_v4  ;;  %v404_v5 = vsel %vm226_vm0, %v587_v3, 0 }
  0xef   : > { %418 = vmatpush1.bf16.msra.mxu0 %v404_v5 }
  0xf2   : > { %590 = vmatmul.mubr.msk.bf16.vlgmr.msra.gmra.mrb[0].mxu0 %vm398_vm9, %v337_v6 }
  0xf8   : > { %v351_v7 = vpop.permute.xlu0 %350 }
 0x1c5   : > { %v443_v8 = vpop.f32.mrb[0].mxu0 }
 0x1c6   : > { %v444_v9 = vadd.f32 %v443_v8, %v351_v7  ;;  %v445_v10 = vpop.f32.mrb[1].mxu0 }
 0x1c7   : > { %v446_v11 = vadd.f32 %v445_v10, %v351_v7  ;;  %v447_v12 = vpop.f32.mrb[2].mxu0 }
 0x1c8   : > { %v450_v13 = vmax.f32 %v444_v9, 0.0  ;;  %v448_v14 = vpop.f32.mrb[3].mxu0 }
 0x1c9   : > { %v451_v15 = vmax.f32 %v446_v11, 0.0 }
 0x1ca   : > { %452 = vst [vmem:[%s1043_s12] sm:$0xff] %v450_v13 }
 0x1cb   : > { %453 = vst [vmem:[%s1043_s12 + $0x8] sm:$0xff] %v451_v15 }
 0x1cc   : > { %760 = shalt.err (!%p757_p6)
}
 0x1cd   : > { %s761_s12 = scalar_lea.hbm %s1090_s15, 256  ;;  %s765_s5 = scalar_lea.hbm %s1150_s3, 1024 }
 0x1ce   : > { %p762_p5 = scmp.ne.s32.totalorder %s1090_s15, %s761_s12  ;;  %p766_p10 = scmp.lt.u32.totalorder %s1090_s15, %s1150_s3 }
 0x1cf   : > { %p767_p11 = scmp.lt.u32.totalorder %s765_s5, %s761_s12  ;;  %p769_p3 = scmp.lt.u32.totalorder %s761_s12, %s1090_s15 }
 0x1d0   : > { %p763_p7 = pnand %p762_p5, %p1178_p8 }
 0x1d1   : > { %p768_p0 = por %p767_p11, %p766_p10 }
 0x1d2   : > { %p764_p9 = pneg %p763_p7 }
 0x1d3   : > { %p770_p1 = por %p769_p3, %p768_p0 }
 0x1d5   : > { %p771_p13 = pnand %p770_p1, %p764_p9 }
 0x1d7   : > { %774 = shalt.err (!%p771_p13)
}
 0x1d8   : > { %608 = dma.vmem_to_hbm [thread:$0]  (%p1178_p8), %s1092_s9, 256, %s1090_s15, %s455_s30  }
 0x1d9 PF: > { %s1179_s11 = sld [smem:[#allocation15_spill]]  ;;  %s1180_s18 = sld [smem:[#allocation21_spill]] }
 0x1da   : > { %p616_p12 = scmp.ge.s32.totalorder %s843_s19, 2 }
 0x1df   : > { %s483_s10 = sand.u32 1, %s1179_s11   ;;  %p1181_p2 = scmp.ne.s32.totalorder %s1180_s18, 0 }
 0x1e0   : > { %s484_s8 = scalar_lea.sflag [#allocation6], %s483_s10 }
 0x1e1   : > { %p611_p4 = pnand %p616_p12, %p1181_p2 }
 0x1e3   : > { %810 = dma.done.wait (!%p611_p4), %s484_s8, 256  }
 0x1e4   : > { %812 = vsyncadd (!%p611_p4), %s484_s8, 4294967040  ;;  %s16_s19 = sadd.s32 1, %s843_s19   ;;  %s1182_s22 = sld [smem:[#allocation16_spill]] }
 0x1e5   : > { %p13_p6 = scmp.ge.s32.totalorder %s16_s19, 6   ;;  %s1183_s14 = sld [smem:[#allocation22_spill]] }
 0x1e6   : > { %s1184_s15 = sld [smem:[#allocation17_spill]]  ;;  %s1185_s16 = sld [smem:[#allocation18_spill]] }
 0x1e7   : > { %s1186_s17 = sld [smem:[#allocation19_spill]]  ;;  %s1187_s18 = sld [smem:[#allocation20_spill]] }
 0x1e8   : > { %s1188_s12 = smov %s819_s13  ;;  %15 = sbr.rel (!%p13_p6) target bundleno = 5 (0x5), region = 85 }
 0x1ea   : > { %s1189_s13 = smov %s1182_s22 }
 0x1ef   :  { %489 = vsyncpa [#allocation6], 1 }
 0x1f0   :  { %491 = vsyncpa [#allocation6 + $0x1], 1 }
 0x1f1   :  { %492 = vsyncmov [#allocation3] }
 0x1f4   :  { %s493_s25 = vpop.sfrf %492 }
 0x1f5   :  { %p597_p8 = scmp.ne.s32.totalorder %s493_s25, 0 }
 0x1f7   :  { %497 = shalt.err (%p597_p8)  }
 0x1f8   :  { %499 = vsyncmov [#allocation3 + $0x1] }
 0x1fb   :  { %s500_s29 = vpop.sfrf %499 }
 0x1fc   :  { %p598_p5 = scmp.ne.s32.totalorder %s500_s29, 0 }
 0x1fe   :  { %504 = shalt.err (%p598_p5)  }

</bundles_post_ra>
